<compile_context>
chip_gen: v5e
topology: v5e:2x2
jax: 0.10.0
libtpu: 0.0.40
codegen_flags: <defaults>
</compile_context>

<pallas_src>
import functools

import jax
import jax.numpy as jnp
from jax.experimental import pallas as pl
from jax.experimental.pallas import tpu as pltpu


def _round_up(n: int, m: int) -> int:
    return (n + m - 1) // m * m


def highway_kernel(x_ref, w_ref, b_ref, out_ref, *, width: int):
    """One grid step: (tb, width) packed rows -> (tb, width) packed output."""
    x = x_ref[...]                                            # (tb, width) f32

    # Single fused MXU dot producing [proj_logits | gate_logits]: (tb, 2*width).
    z = jnp.dot(x, w_ref[...], preferred_element_type=jnp.float32) + b_ref[...]

    proj = jnp.maximum(z[:, :width], 0.0)    # ReLU   (VPU), vreg-aligned slice
    gate = jax.nn.sigmoid(z[:, width:])      # sigmoid (EUP), vreg-aligned slice

    # Highway combine: x + g*(p - x) == g*p + (1-g)*x.
    out_ref[...] = x + gate * (proj - x)


def fuse_highway_params(w_proj, b_proj, w_gate, b_gate):
    """One-time parameter fusion (call at init, NOT per forward).

    w_* are in x @ W layout (i.e. nn.Linear.weight.T), shape (E, E); b_* (E,).
    Returns:
      w_fused: (g*E, 2*g*E) block-diagonal [proj | gate] weight,
      b_fused: (1, 2*g*E) tiled bias,
      groups:  g = number of batch rows packed per 128-lane row.
    """
    E = w_proj.shape[0]
    g = (128 // E) if (E < 128 and 128 % E == 0) else 1
    eye = jnp.eye(g, dtype=w_proj.dtype)
    wp_bd = jnp.kron(eye, w_proj)                             # (g*E, g*E)
    wg_bd = jnp.kron(eye, w_gate)                             # (g*E, g*E)
    w_fused = jnp.concatenate([wp_bd, wg_bd], axis=1)         # (g*E, 2*g*E)
    b_fused = jnp.concatenate([jnp.tile(b_proj, g), jnp.tile(b_gate, g)])
    b_fused = b_fused.reshape(1, 2 * g * E)
    return w_fused, b_fused, g


@functools.partial(jax.jit, static_argnums=(3,), static_argnames=("tile_rows",))
def highway_forward(x, w_fused, b_fused, groups, *, tile_rows: int = 2048):
    """x: (B, E) f32.  w_fused/b_fused/groups from fuse_highway_params."""
    B, E = x.shape
    g = groups
    width = g * E                      # packed lane width (128 when E | 128)
    assert w_fused.shape == (width, 2 * width)

    Bg = -(-B // g)                                    # packed rows needed
    tb = _round_up(min(tile_rows, _round_up(Bg, 8)), 8)
    Bg_p = _round_up(Bg, tb)                           # padded packed rows
    Bp = Bg_p * g                                      # padded batch rows

    x_in = jnp.pad(x, ((0, Bp - B), (0, 0))) if Bp != B else x
    x_pk = x_in.reshape(Bg_p, width)                   # free row-major reshape

    kernel = functools.partial(highway_kernel, width=width)
    out_pk = pl.pallas_call(
        kernel,
        out_shape=jax.ShapeDtypeStruct((Bg_p, width), jnp.float32),
        grid=(Bg_p // tb,),
        in_specs=[
            pl.BlockSpec((tb, width), lambda i: (i, 0)),       # x tile (pipelined)
            pl.BlockSpec((width, 2 * width), lambda i: (0, 0)),  # fused W (resident)
            pl.BlockSpec((1, 2 * width), lambda i: (0, 0)),      # fused b (resident)
        ],
        out_specs=pl.BlockSpec((tb, width), lambda i: (i, 0)),
        compiler_params=pltpu.CompilerParams(
            dimension_semantics=("parallel",),   # batch grid shardable across v7x TCs
        ),
    )(x_pk, w_fused, b_fused)

    return out_pk.reshape(Bp, E)[:B]


def reference_forward(x, w_proj, b_proj, w_gate, b_gate):
    proj = jax.nn.relu(x @ w_proj + b_proj)
    gate = jax.nn.sigmoid(x @ w_gate + b_gate)
    return gate * proj + (1.0 - gate) * x


if __name__ == "__main__":
    e_word = 32

    key = jax.random.PRNGKey(0)
    kx, kwp, kbp, kwg, kbg, kx2 = jax.random.split(key, 6)

    # Deterministic synthetic parameters (shapes follow nn.Linear(e_word, e_word),
    # stored in x @ W layout, i.e. W here is nn.Linear.weight.T).
    bound = 1.0 / jnp.sqrt(e_word)
    w_proj = jax.random.uniform(kwp, (e_word, e_word), jnp.float32, -bound, bound)
    b_proj = jax.random.uniform(kbp, (e_word,), jnp.float32, -bound, bound)
    w_gate = jax.random.uniform(kwg, (e_word, e_word), jnp.float32, -bound, bound)
    b_gate = jax.random.uniform(kbg, (e_word,), jnp.float32, -bound, bound)

    # One-time parameter fusion (hoisted out of the per-call path).
    w_fused, b_fused, groups = fuse_highway_params(w_proj, b_proj, w_gate, b_gate)

    # Small shape matching the module spec: (batch_size, e_word).
    batch_size = 8
    x = jax.random.normal(kx, (batch_size, e_word), dtype=jnp.float32)
    out = jax.block_until_ready(highway_forward(x, w_fused, b_fused, groups))
    ref = reference_forward(x, w_proj, b_proj, w_gate, b_gate)
    assert out.shape == (batch_size, e_word)
    assert jnp.allclose(out, ref, atol=1e-5, rtol=1e-5), "mismatch vs reference (small)"

    # Larger, non-multiple batch with a small tile override to exercise the
    # padding path and a multi-step pipelined grid.
    big_b = 1000
    x_big = jax.random.normal(kx2, (big_b, e_word), dtype=jnp.float32)
    out_big = jax.block_until_ready(
        highway_forward(x_big, w_fused, b_fused, groups, tile_rows=64))
    ref_big = reference_forward(x_big, w_proj, b_proj, w_gate, b_gate)
    assert out_big.shape == (big_b, e_word)
    assert jnp.allclose(out_big, ref_big, atol=1e-5, rtol=1e-5), "mismatch vs reference (big)"

    print("KERNEL_OK")
</pallas_src>

<mosaic_0001>
module attributes {stable_mosaic.version = 11 : i64} {
  func.func @highway_kernel(%arg0: i32, %arg1: memref<8x128xf32, #tpu.memory_space<vmem>>, %arg2: memref<128x256xf32, #tpu.memory_space<vmem>>, %arg3: memref<1x256xf32, #tpu.memory_space<vmem>>, %arg4: memref<8x128xf32, #tpu.memory_space<vmem>>) attributes {dimension_semantics = [#tpu.dimension_semantics<parallel>], iteration_bounds = array<i64: 1>, scalar_prefetch = 0 : i64, scratch_operands = 0 : i64, tpu.core_type = #tpu.core_type<tc>, window_params = [{transform_indices = @transform_0, window_bounds = array<i64: 8, 128>}, {pipeline_mode = #tpu.pipeline_mode<synchronous>, transform_indices = @transform_1, window_bounds = array<i64: 128, 256>}, {pipeline_mode = #tpu.pipeline_mode<synchronous>, transform_indices = @transform_2, window_bounds = array<i64: 1, 256>}, {transform_indices = @transform_3, window_bounds = array<i64: 8, 128>}]} {
    %c0 = arith.constant 0 : index
    %c0_0 = arith.constant 0 : index
    %0 = vector.load %arg1[%c0, %c0_0] : memref<8x128xf32, #tpu.memory_space<vmem>>, vector<8x128xf32>
    %c0_1 = arith.constant 0 : index
    %c0_2 = arith.constant 0 : index
    %1 = vector.load %arg2[%c0_1, %c0_2] : memref<128x256xf32, #tpu.memory_space<vmem>>, vector<128x256xf32>
    %cst = arith.constant dense<0.000000e+00> : vector<8x256xf32>
    %2 = tpu.matmul %0, %1, %cst {dimension_numbers = #tpu.dot_dimension_numbers<[1], [0], [0], [1], [0, 0, 1, 1], [], []>} : vector<8x128xf32>, vector<128x256xf32>, vector<8x256xf32> -> vector<8x256xf32>
    %c0_3 = arith.constant 0 : index
    %c0_4 = arith.constant 0 : index
    %3 = vector.load %arg3[%c0_3, %c0_4] : memref<1x256xf32, #tpu.memory_space<vmem>>, vector<1x256xf32>
    %4 = vector.broadcast %3 : vector<1x256xf32> to vector<8x256xf32>
    %5 = arith.addf %2, %4 : vector<8x256xf32>
    %6 = vector.extract_strided_slice %5 {offsets = [0, 0], sizes = [8, 128], strides = [1, 1]} : vector<8x256xf32> to vector<8x128xf32>
    %cst_5 = arith.constant 0.000000e+00 : f32
    %7 = vector.broadcast %cst_5 : f32 to vector<8x128xf32>
    %8 = arith.maximumf %6, %7 : vector<8x128xf32>
    %9 = vector.extract_strided_slice %5 {offsets = [0, 128], sizes = [8, 128], strides = [1, 1]} : vector<8x256xf32> to vector<8x128xf32>
    %10 = arith.negf %9 : vector<8x128xf32>
    %11 = math.exp %10 : vector<8x128xf32>
    %cst_6 = arith.constant 1.000000e+00 : f32
    %12 = vector.broadcast %cst_6 : f32 to vector<8x128xf32>
    %13 = arith.addf %12, %11 : vector<8x128xf32>
    %14 = arith.divf %12, %13 : vector<8x128xf32>
    %15 = arith.subf %8, %0 : vector<8x128xf32>
    %16 = arith.mulf %14, %15 : vector<8x128xf32>
    %17 = arith.addf %0, %16 : vector<8x128xf32>
    %c0_7 = arith.constant 0 : index
    %c0_8 = arith.constant 0 : index
    %18 = vector.load %arg4[%c0_7, %c0_8] : memref<8x128xf32, #tpu.memory_space<vmem>>, vector<8x128xf32>
    tpu.vector_store %arg4[%c0_7, %c0_8], %17 {strides = array<i32>} : memref<8x128xf32, #tpu.memory_space<vmem>>, vector<8x128xf32>,
    return
  }
  func.func @transform_0(%arg0: i32) -> (i32, i32) {
    %c0_i32 = arith.constant 0 : i32
    %c0_i32_0 = arith.constant 0 : i32
    return %arg0, %c0_i32 : i32, i32
  }
  func.func @transform_1(%arg0: i32) -> (i32, i32) {
    %c0_i32 = arith.constant 0 : i32
    %c0_i32_0 = arith.constant 0 : i32
    %c0_i32_1 = arith.constant 0 : i32
    return %c0_i32, %c0_i32_0 : i32, i32
  }
  func.func @transform_2(%arg0: i32) -> (i32, i32) {
    %c0_i32 = arith.constant 0 : i32
    %c0_i32_0 = arith.constant 0 : i32
    %c0_i32_1 = arith.constant 0 : i32
    return %c0_i32, %c0_i32_0 : i32, i32
  }
  func.func @transform_3(%arg0: i32) -> (i32, i32) {
    %c0_i32 = arith.constant 0 : i32
    %c0_i32_0 = arith.constant 0 : i32
    return %arg0, %c0_i32 : i32, i32
  }
}

</mosaic_0001>

<bundles_post_ra>
// kernel: highway_forward.1
= control target key start
LH: loop header
LB: loop body
LE: loop exit
PB: predicated region body
PF: predicated region fallthrough
CT: control target
= control target key end

     0   :  { %8 = vsyncpa [#allocation3], 0  ;;  %s172_s15 = smov [#allocation2]   ;;  %s173_s17 = smov 256   ;;  %s207_s0 = inlined_call_operand.vmem [shape: f32[8,128], index: 0, kind: input, shape index: {}]   ;;  %s208_s1 = inlined_call_operand.hbm [shape: f32[128,256], index: 1, kind: input, shape index: {}]   ;;  %s209_s2 = inlined_call_operand.vmem [shape: f32[1,256], index: 2, kind: input, shape index: {}]   ;;  %s210_s3 = inlined_call_operand.vmem [shape: f32[8,128], index: 3, kind: output, shape index: {}]  }
   0x1   :  { %s15_s14 = sshll.u32 %s208_s1, 4  ;;  %s17_s16 = sshll.u32 %s172_s15, 4  ;;  %s16_s14 = int_to_ptr.hbm [resolvable:$true] %s15_s14  ;;  %s18_s16 = int_to_ptr.vmem [resolvable:$true] %s17_s16 }
   0x2   :  { %s174_s18 = smov 16  }
   0x3   :  { %23 = dma.hbm_to_vmem [thread:$0]  %s16_s14, 4096, %s18_s16, [#allocation3], %s173_s17, %s173_s17, %s174_s18  }
   0x4   :  { %170 = dma.done.wait [#allocation3], 4096  }
   0x5   :  { %171 = vsyncadd [#allocation3], 4294963200  ;;  %v62_v0 = vld [vmem:[#allocation2 + $0xf8] sm:$0xff]  ;;  %v60_v1 = vld [vmem:[#allocation2 + $0xe8] sm:$0xff] }
   0x6   :  { %89 = vmatpush.msra.mxu1 %v62_v0  ;;  %v58_v2 = vld [vmem:[#allocation2 + $0xd8] sm:$0xff]  ;;  %v56_v3 = vld [vmem:[#allocation2 + $0xc8] sm:$0xff]  ;;  %v61_v4 = vld [vmem:[#allocation2 + $0xf0] sm:$0xff] }
   0x7   :  { %v59_v5 = vld [vmem:[#allocation2 + $0xe0] sm:$0xff]  ;;  %69 = vmatpush.msra.mxu0 %v61_v4  ;;  %v54_v6 = vld [vmem:[#allocation2 + $0xb8] sm:$0xff]  ;;  %v57_v7 = vld [vmem:[#allocation2 + $0xd0] sm:$0xff] }
   0x8   :  { %90 = vmatpush.msra.mxu1 %v60_v1  ;;  %v52_v8 = vld [vmem:[#allocation2 + $0xa8] sm:$0xff]  ;;  %v55_v9 = vld [vmem:[#allocation2 + $0xc0] sm:$0xff]  ;;  %v50_v10 = vld [vmem:[#allocation2 + $0x98] sm:$0xff] }
   0x9   :  { %70 = vmatpush.msra.mxu0 %v59_v5  ;;  %v53_v11 = vld [vmem:[#allocation2 + $0xb0] sm:$0xff]  ;;  %v48_v12 = vld [vmem:[#allocation2 + $0x88] sm:$0xff]  ;;  %v51_v13 = vld [vmem:[#allocation2 + $0xa0] sm:$0xff] }
   0xa   :  { %91 = vmatpush.msra.mxu1 %v58_v2  ;;  %v46_v14 = vld [vmem:[#allocation2 + $0x78] sm:$0xff]  ;;  %v49_v15 = vld [vmem:[#allocation2 + $0x90] sm:$0xff]  ;;  %v44_v16 = vld [vmem:[#allocation2 + $0x68] sm:$0xff] }
   0xb   :  { %71 = vmatpush.msra.mxu0 %v57_v7  ;;  %v47_v17 = vld [vmem:[#allocation2 + $0x80] sm:$0xff]  ;;  %v42_v18 = vld [vmem:[#allocation2 + $0x58] sm:$0xff]  ;;  %v45_v19 = vld [vmem:[#allocation2 + $0x70] sm:$0xff] }
   0xc   :  { %92 = vmatpush.msra.mxu1 %v56_v3  ;;  %v40_v20 = vld [vmem:[#allocation2 + $0x48] sm:$0xff]  ;;  %v43_v21 = vld [vmem:[#allocation2 + $0x60] sm:$0xff]  ;;  %v38_v22 = vld [vmem:[#allocation2 + $0x38] sm:$0xff] }
   0xd   :  { %72 = vmatpush.msra.mxu0 %v55_v9  ;;  %v41_v23 = vld [vmem:[#allocation2 + $0x50] sm:$0xff]  ;;  %v36_v24 = vld [vmem:[#allocation2 + $0x28] sm:$0xff]  ;;  %v39_v25 = vld [vmem:[#allocation2 + $0x40] sm:$0xff] }
   0xe   :  { %93 = vmatpush.msra.mxu1 %v54_v6  ;;  %v34_v26 = vld [vmem:[#allocation2 + $0x18] sm:$0xff]  ;;  %v37_v27 = vld [vmem:[#allocation2 + $0x30] sm:$0xff]  ;;  %v32_v28 = vld [vmem:[#allocation2 + $0x8] sm:$0xff] }
   0xf   :  { %73 = vmatpush.msra.mxu0 %v53_v11  ;;  %v35_v29 = vld [vmem:[#allocation2 + $0x20] sm:$0xff]  ;;  %v33_v31 = vld [vmem:[#allocation2 + $0x10] sm:$0xff] }
  0x10   :  { %94 = vmatpush.msra.mxu1 %v52_v8  ;;  %v30_v30 = vld [vmem:[%s207_s0] sm:$0xff] }
  0x11   :  { %74 = vmatpush.msra.mxu0 %v51_v13  ;;  %v31_v32 = vld [vmem:[#allocation2] sm:$0xff] }
  0x12   :  { %95 = vmatpush.msra.mxu1 %v50_v10  ;;  %v63_v33 = vld [vmem:[%s209_s2] sm:$0x3] }
  0x13   :  { %75 = vmatpush.msra.mxu0 %v49_v15  ;;  %v66_v34 = vperm.slane %v63_v33, 1  ;;  %v65_v40 = vperm.slane %v63_v33, 0 }
  0x14   :  { %96 = vmatpush.msra.mxu1 %v48_v12 }
  0x15   :  { %76 = vmatpush.msra.mxu0 %v47_v17 }
  0x16   :  { %97 = vmatpush.msra.mxu1 %v46_v14 }
  0x17   :  { %77 = vmatpush.msra.mxu0 %v45_v19 }
  0x18   :  { %98 = vmatpush.msra.mxu1 %v44_v16 }
  0x19   :  { %78 = vmatpush.msra.mxu0 %v43_v21 }
  0x1a   :  { %99 = vmatpush.msra.mxu1 %v42_v18 }
  0x1b   :  { %79 = vmatpush.msra.mxu0 %v41_v23 }
  0x1c   :  { %100 = vmatpush.msra.mxu1 %v40_v20 }
  0x1d   :  { %80 = vmatpush.msra.mxu0 %v39_v25 }
  0x1e   :  { %101 = vmatpush.msra.mxu1 %v38_v22 }
  0x1f   :  { %81 = vmatpush.msra.mxu0 %v37_v27 }
  0x20   :  { %102 = vmatpush.msra.mxu1 %v36_v24 }
  0x21   :  { %82 = vmatpush.msra.mxu0 %v35_v29 }
  0x22   :  { %103 = vmatpush.msra.mxu1 %v34_v26 }
  0x23   :  { %83 = vmatpush.msra.mxu0 %v33_v31 }
  0x24   :  { %104 = vmatpush.msra.mxu1 %v32_v28 }
  0x25   :  { %105 = vmatmul.f32.vlgmr.msra.gmra.mxu1 %v30_v30  ;;  %84 = vmatpush.msra.mxu0 %v31_v32 }
  0x26   :  { %85 = vmatmul.f32.vlgmr.msra.gmra.mxu0 %v30_v30 }
  0xa2   :  { %v106_v35 = vpop.f32.mrf.mxu1 }
  0xa3   :  { %v107_v36 = vadd.f32 %v106_v35, %v66_v34  ;;  %v86_v41 = vpop.f32.mrf.mxu0 }
  0xa4   :  { %v87_v42 = vadd.f32 %v86_v41, %v65_v40 }
  0xa5   :  { %v138_v37 = vmul.f32 -1.442695, %v107_v36 }
  0xa6   :  { %v109_v46 = vmax.f32 %v87_v42, 0.0 }
  0xa7   :  { %142 = vpow2.f32 %v138_v37 }
  0xa8   :  { %v129_v51 = vsub.f32 %v109_v46, %v30_v30 }
  0xad   :  { %v143_v38 = vpop.eup %142 }
  0xae   :  { %v113_v39 = vadd.f32 1.0, %v143_v38 }
  0xb0   :  { %144 = vrcp.f32 %v113_v39  ;;  %v125_v47 = vand.u32 2147483648, %v113_v39  ;;  %v123_v49 = vand.u32 2147483647, %v113_v39  ;;  %vm119_vm1 = vweird.f32 %v113_v39 }
  0xb2   :  { %v126_v52 = vor.u32 1.1754944e-38, %v125_v47  ;;  %vm124_vm3 = vcmp.eq.f32.partialorder %v123_v49, 8.507059e+37 }
  0xb6   :  { %v145_v43 = vpop.eup %144 }
  0xb7   :  { %v115_v44 = vmul.f32 %v145_v43, %v113_v39  ;;  %vm120_vm0 = vweird.f32 %v145_v43 }
  0xb8   :  { %vm121_vm2 = vmor %vm119_vm1, %vm120_vm0 }
  0xb9   :  { %v116_v45 = vsub.f32 1.0, %v115_v44 }
  0xbb   :  { %v117_v48 = vmul.f32 %v145_v43, %v116_v45 }
  0xbd   :  { %v118_v50 = vadd.f32 %v145_v43, %v117_v48 }
  0xbf   :  { %v122_v53 = vsel %vm121_vm2, %v145_v43, %v118_v50 }
  0xc0   :  { %v127_v54 = vsel %vm124_vm3, %v126_v52, %v122_v53 }
  0xc1   :  { %v130_v55 = vmul.f32 %v129_v51, %v127_v54 }
  0xc3   :  { %v131_v56 = vadd.f32 %v130_v55, %v30_v30 }
  0xc5   :  { %132 = vst [vmem:[%s210_s3] sm:$0xff] %v131_v56 }
  0xc6   :  { %137 = vsyncpa [#allocation3], 1 }

</bundles_post_ra>
